<compile_context>
chip_gen: v7x
topology: tpu7x:2x2x1
jax: 0.10.0
libtpu: 0.0.40
codegen_flags: <defaults>
</compile_context>

<pallas_src>
import functools

import jax
import jax.numpy as jnp
from jax.experimental import pallas as pl
from jax.experimental.pallas import tpu as pltpu


def _round_up(x: int, m: int) -> int:
    return ((x + m - 1) // m) * m


def _sublane_multiple(dtype) -> int:
    # Sub-32-bit dtypes pack along sublanes: f32 -> 8 rows/vreg, bf16 -> 16, int8/fp8 -> 32.
    itemsize = jnp.dtype(dtype).itemsize
    return max(8, 32 // max(itemsize, 1))


def _pick_tile(dim: int, max_tile: int, align: int) -> int:
    """Largest tile <= max_tile that is a multiple of `align` and, when possible,
    divides `dim` exactly so the wrapper never has to pad that axis."""
    max_tile = max(align, max_tile - (max_tile % align))
    dim_padded = _round_up(dim, align)
    if dim_padded <= max_tile:
        return dim_padded
    if dim % align == 0:
        for cand in range(max_tile, align - 1, -align):
            if dim % cand == 0:
                return cand
    return max_tile


@functools.lru_cache(maxsize=None)
def _vmem_physical_bytes() -> int:
    try:
        return int(pltpu.get_tpu_info().vmem_capacity_bytes)
    except Exception:
        return 64 * 1024 * 1024  # conservative fallback: assume v7x-sized VMEM


def _tile_caps(vmem_bytes: int):
    if vmem_bytes >= 100 * 1024 * 1024:
        # v5e / v6e: 128 MiB physical VMEM -> push tiles hard.
        return 2048, 2048, 512
    # v7x: 64 MiB physical VMEM -> re-derived smaller tiles (still >= MXU-friendly).
    return 1024, 1024, 512


def _linear_head_kernel_acc(x_ref, w_ref, o_ref, acc_ref):
    """Non-f32 output: f32 VMEM accumulator, cast on the last K step."""
    @pl.when(pl.program_id(2) == 0)
    def _init():
        acc_ref[...] = jnp.zeros_like(acc_ref)

    # x tile: [tm, tk], w tile (PyTorch layout): [tn, tk]  -> contract shared K dim (NT).
    acc_ref[...] += jax.lax.dot_general(
        x_ref[...],
        w_ref[...],
        dimension_numbers=(((1,), (1,)), ((), ())),
        preferred_element_type=jnp.float32,
    )

    @pl.when(pl.program_id(2) == pl.num_programs(2) - 1)
    def _finalize():
        o_ref[...] = acc_ref[...].astype(o_ref.dtype)


def _linear_head_kernel_f32(x_ref, w_ref, o_ref):
    """f32 output: accumulate directly into the resident output tile (no scratch)."""
    @pl.when(pl.program_id(2) == 0)
    def _init():
        o_ref[...] = jnp.zeros_like(o_ref)

    o_ref[...] += jax.lax.dot_general(
        x_ref[...],
        w_ref[...],
        dimension_numbers=(((1,), (1,)), ((), ())),
        preferred_element_type=jnp.float32,
    )


@functools.partial(jax.jit, static_argnames=("tm", "tn", "tk"))
def linear_head(x, weight, *, tm: int | None = None, tn: int | None = None, tk: int | None = None):
    """x: [..., emb_dim]; weight: [num_classes, emb_dim] (PyTorch nn.Linear layout).

    Returns [..., num_classes] = x @ weight.T (bias-free), matching LinearHead.forward.
    """
    *lead, K = x.shape
    N, Kw = weight.shape
    assert K == Kw, f"feature-dim mismatch: x has {K}, weight has {Kw}"

    x2 = x.reshape(-1, K)
    B = x2.shape[0]

    vmem_bytes = _vmem_physical_bytes()
    tm_cap, tn_cap, tk_cap = _tile_caps(vmem_bytes)
    sub_m = _sublane_multiple(x.dtype)

    tn_user = tn is not None
    tm = _pick_tile(B, tm_cap, sub_m) if tm is None else _round_up(int(tm), sub_m)
    tn = _pick_tile(N, tn_cap, 128) if tn is None else _round_up(int(tn), 128)
    tk = _pick_tile(K, tk_cap, 128) if tk is None else _round_up(int(tk), 128)

    Mp, Np, Kp = _round_up(B, tm), _round_up(N, tn), _round_up(K, tk)

    # v7x has 2 TensorCores sharing the grid's parallel axes: keep >= 2 parallel output
    # tiles when possible so the second core is not idle in the small-batch regime.
    if (not tn_user) and (Mp // tm) * (Np // tn) < 2 and tn % 256 == 0:
        tn //= 2
        Np = _round_up(N, tn)

    # Zero-pad only when needed (zeros contribute nothing to the dot).  For vocab sizes
    # that are multiples of 128 the tile picker ensures Np == N, so the (large) weight is
    # never copied; padding K pads both operands but K is tiny relative to the weight.
    xp = x2 if (Mp == B and Kp == K) else jnp.pad(x2, ((0, Mp - B), (0, Kp - K)))
    wp = weight if (Np == N and Kp == K) else jnp.pad(weight, ((0, Np - N), (0, Kp - K)))

    grid = (Mp // tm, Np // tn, Kp // tk)

    out_dtype = x.dtype
    f32_out = jnp.dtype(out_dtype) == jnp.dtype(jnp.float32)
    kernel = _linear_head_kernel_f32 if f32_out else _linear_head_kernel_acc
    scratch = [] if f32_out else [pltpu.VMEM((tm, tn), jnp.float32)]

    x_bytes = xp.size * jnp.dtype(xp.dtype).itemsize
    w_bytes = wp.size * jnp.dtype(wp.dtype).itemsize
    o_bytes = Mp * Np * jnp.dtype(out_dtype).itemsize
    cost = pl.CostEstimate(
        flops=2 * Mp * Np * Kp,
        bytes_accessed=x_bytes + w_bytes + o_bytes,
        transcendentals=0,
    )

    # ~75% of physical VMEM: ~96 MiB on 128 MiB parts, ~48 MiB on v7x's 64 MiB.
    vmem_limit = max(32 * 1024 * 1024, min((vmem_bytes * 3) // 4, vmem_bytes - 8 * 1024 * 1024))

    out_padded = pl.pallas_call(
        kernel,
        out_shape=jax.ShapeDtypeStruct((Mp, Np), out_dtype),
        grid_spec=pltpu.PrefetchScalarGridSpec(
            num_scalar_prefetch=0,
            grid=grid,
            in_specs=[
                pl.BlockSpec((tm, tk), lambda i, j, k: (i, k)),  # activation tile
                pl.BlockSpec((tn, tk), lambda i, j, k: (j, k)),  # weight tile, PyTorch layout
            ],
            out_specs=pl.BlockSpec((tm, tn), lambda i, j, k: (i, j)),
            scratch_shapes=scratch,
        ),
        compiler_params=pltpu.CompilerParams(
            dimension_semantics=("parallel", "parallel", "arbitrary"),
            vmem_limit_bytes=int(vmem_limit),
        ),
        cost_estimate=cost,
    )(xp, wp)

    out = out_padded if (Mp == B and Np == N) else out_padded[:B, :N]
    return out.reshape(*lead, N)


if __name__ == "__main__":
    key = jax.random.PRNGKey(0)
    kx, kw = jax.random.split(key)

    batch = 8
    emb_dim = 60
    num_classes = 10

    x = jax.random.normal(kx, (batch, emb_dim), dtype=jnp.float32)
    # Deterministic parameter init (Kaiming-uniform-ish bound, like PyTorch default).
    bound = 1.0 / (emb_dim ** 0.5)
    weight = jax.random.uniform(
        kw, (num_classes, emb_dim), minval=-bound, maxval=bound, dtype=jnp.float32
    )

    out = jax.block_until_ready(linear_head(x, weight))

    # Pure-JAX reference check.
    ref = x @ weight.T
    assert out.shape == (batch, num_classes)
    assert jnp.allclose(out, ref, atol=1e-5, rtol=1e-5), float(jnp.max(jnp.abs(out - ref)))

    print("KERNEL_OK")
</pallas_src>

<mosaic_0001>
module attributes {stable_mosaic.version = 11 : i64} {
  func.func @_linear_head_kernel_f32(%arg0: i32, %arg1: i32, %arg2: i32, %arg3: memref<8x128xf32, #tpu.memory_space<vmem>>, %arg4: memref<128x128xf32, #tpu.memory_space<vmem>>, %arg5: memref<8x128xf32, #tpu.memory_space<vmem>>) attributes {dimension_semantics = [#tpu.dimension_semantics<parallel>, #tpu.dimension_semantics<parallel>, #tpu.dimension_semantics<arbitrary>], iteration_bounds = array<i64: 1, 1, 1>, scalar_prefetch = 0 : i64, scratch_operands = 0 : i64, tpu.core_type = #tpu.core_type<tc>, window_params = [{transform_indices = @transform_0, window_bounds = array<i64: 8, 128>}, {transform_indices = @transform_1, window_bounds = array<i64: 128, 128>}, {transform_indices = @transform_2, window_bounds = array<i64: 8, 128>}]} {
    %c0_i32 = arith.constant 0 : i32
    %0 = arith.cmpi eq, %arg2, %c0_i32 : i32
    %1 = arith.extui %0 : i1 to i32
    %c0_i32_0 = arith.constant 0 : i32
    %2 = arith.cmpi ne, %1, %c0_i32_0 : i32
    scf.if %2 {
      %cst_8 = arith.constant 0.000000e+00 : f32
      %9 = vector.broadcast %cst_8 : f32 to vector<8x128xf32>
      %c0_9 = arith.constant 0 : index
      %c0_10 = arith.constant 0 : index
      %10 = vector.load %arg5[%c0_9, %c0_10] : memref<8x128xf32, #tpu.memory_space<vmem>>, vector<8x128xf32>
      tpu.vector_store %arg5[%c0_9, %c0_10], %9 {strides = array<i32>} : memref<8x128xf32, #tpu.memory_space<vmem>>, vector<8x128xf32>,
    } else {
    }
    %c0 = arith.constant 0 : index
    %c0_1 = arith.constant 0 : index
    %3 = vector.load %arg5[%c0, %c0_1] : memref<8x128xf32, #tpu.memory_space<vmem>>, vector<8x128xf32>
    %c0_2 = arith.constant 0 : index
    %c0_3 = arith.constant 0 : index
    %4 = vector.load %arg3[%c0_2, %c0_3] : memref<8x128xf32, #tpu.memory_space<vmem>>, vector<8x128xf32>
    %c0_4 = arith.constant 0 : index
    %c0_5 = arith.constant 0 : index
    %5 = vector.load %arg4[%c0_4, %c0_5] : memref<128x128xf32, #tpu.memory_space<vmem>>, vector<128x128xf32>
    %cst = arith.constant dense<0.000000e+00> : vector<8x128xf32>
    %6 = tpu.matmul %4, %5, %cst {dimension_numbers = #tpu.dot_dimension_numbers<[1], [1], [0], [0], [0, 0, 1, 0], [], []>} : vector<8x128xf32>, vector<128x128xf32>, vector<8x128xf32> -> vector<8x128xf32>
    %7 = arith.addf %3, %6 : vector<8x128xf32>
    %c0_6 = arith.constant 0 : index
    %c0_7 = arith.constant 0 : index
    %8 = vector.load %arg5[%c0_6, %c0_7] : memref<8x128xf32, #tpu.memory_space<vmem>>, vector<8x128xf32>
    tpu.vector_store %arg5[%c0_6, %c0_7], %7 {strides = array<i32>} : memref<8x128xf32, #tpu.memory_space<vmem>>, vector<8x128xf32>,
    return
  }
  func.func @transform_0(%arg0: i32, %arg1: i32, %arg2: i32) -> (i32, i32) {
    %c0_i32 = arith.constant 0 : i32
    return %arg0, %arg2 : i32, i32
  }
  func.func @transform_1(%arg0: i32, %arg1: i32, %arg2: i32) -> (i32, i32) {
    %c0_i32 = arith.constant 0 : i32
    return %arg1, %arg2 : i32, i32
  }
  func.func @transform_2(%arg0: i32, %arg1: i32, %arg2: i32) -> (i32, i32) {
    %c0_i32 = arith.constant 0 : i32
    return %arg0, %arg1 : i32, i32
  }
}

</mosaic_0001>

<bundles_post_ra>
// kernel: linear_head.1
= control target key start
LH: loop header
LB: loop body
LE: loop exit
PB: predicated region body
PF: predicated region fallthrough
CT: control target
= control target key end

     0   :  { %v225_v2 = vmov 0.0|0.0   ;;  %vm226_vm0 = vmmov 0   ;;  %v227_v4 = vmov 0.0   ;;  %s307_s0 = inlined_call_operand.vmem [shape: f32[8,128], index: 0, kind: input, shape index: {}]   ;;  %s308_s1 = inlined_call_operand.vmem [shape: f32[128,128], index: 1, kind: input, shape index: {}]   ;;  %s309_s2 = inlined_call_operand.hbm [shape: f32[8,128], index: 2, kind: output, shape index: {}]  }
   0x1   :  { %v19_v0 = vld [vmem:[%s308_s1] sm:$0xff]  ;;  %v20_v1 = vld [vmem:[%s308_s1 + $0x8] sm:$0xff]  ;;  %173 = vmatprep.subr.bf16.mxu0 %v225_v2  ;;  %170 = vmatprep.mubr.msk.f32.mxu0 %vm226_vm0, %v227_v4  ;;  %v21_v5 = vld [vmem:[%s308_s1 + $0x10] sm:$0xff] }
   0x2   :  { %v174_v3 = vpack.c.bf16 %v20_v1, %v19_v0  ;;  %v22_v6 = vld [vmem:[%s308_s1 + $0x18] sm:$0xff] }
   0x4   :  { %175 = vmatpush3.bf16.xpose.msra.mxu0 %v174_v3 }
   0x5   :  { %176 = vmatprep.subr.bf16.mxu0 %v225_v2 }
   0x6   :  { %7 = vsyncpa [#allocation3], 0  ;;  %v177_v7 = vpack.c.bf16 %v22_v6, %v21_v5  ;;  %v23_v8 = vld [vmem:[%s308_s1 + $0x20] sm:$0xff]  ;;  %v24_v9 = vld [vmem:[%s308_s1 + $0x28] sm:$0xff]  ;;  %s228_s15 = smov [#allocation2]  }
   0x7   :  { %v180_v10 = vpack.c.bf16 %v24_v9, %v23_v8  ;;  %v25_v11 = vld [vmem:[%s308_s1 + $0x30] sm:$0xff]  ;;  %v26_v12 = vld [vmem:[%s308_s1 + $0x38] sm:$0xff]  ;;  %v27_v14 = vld [vmem:[%s308_s1 + $0x40] sm:$0xff]  ;;  %s113_s16 = sshll.u32 %s228_s15, 4  ;;  %s114_s16 = int_to_ptr.vmem [resolvable:$true] %s113_s16 }
   0x8   :  { %v183_v13 = vpack.c.bf16 %v26_v12, %v25_v11  ;;  %v28_v15 = vld [vmem:[%s308_s1 + $0x48] sm:$0xff]  ;;  %v29_v17 = vld [vmem:[%s308_s1 + $0x50] sm:$0xff]  ;;  %v30_v18 = vld [vmem:[%s308_s1 + $0x58] sm:$0xff]  ;;  %s201_s17 = scalar_lea.vmem %s114_s16, 128  ;;  %p206_p1 = scmp.lt.s32.totalorder %s114_s16, %s114_s16 }
   0x9   :  { %v186_v16 = vpack.c.bf16 %v28_v15, %v27_v14  ;;  %v189_v19 = vpack.c.bf16 %v30_v18, %v29_v17  ;;  %v31_v20 = vld [vmem:[%s308_s1 + $0x60] sm:$0xff]  ;;  %v32_v21 = vld [vmem:[%s308_s1 + $0x68] sm:$0xff]  ;;  %v33_v23 = vld [vmem:[%s308_s1 + $0x70] sm:$0xff]  ;;  %p202_p0 = scmp.ne.s32.totalorder %s114_s16, %s201_s17  ;;  %p207_p2 = scmp.lt.s32.totalorder %s201_s17, %s201_s17 }
   0xa   :  { %v192_v22 = vpack.c.bf16 %v32_v21, %v31_v20  ;;  %v34_v24 = vld [vmem:[%s308_s1 + $0x78] sm:$0xff]  ;;  %v18_v26 = vld [vmem:[%s307_s0] sm:$0xff] }
   0xb   :  { %v195_v25 = vpack.c.bf16 %v34_v24, %v33_v23  ;;  %p208_p3 = por %p207_p2, %p206_p1 }
   0xc   :  { %178 = vmatpush3.bf16.xpose.msra.mxu0 %v177_v7 }
   0xd   :  { %179 = vmatprep.subr.bf16.mxu0 %v225_v2  ;;  %p209_p4 = pnand %p208_p3, %p202_p0 }
  0x14   :  { %181 = vmatpush3.bf16.xpose.msra.mxu0 %v180_v10 }
  0x15   :  { %182 = vmatprep.subr.bf16.mxu0 %v225_v2 }
  0x1c   :  { %184 = vmatpush3.bf16.xpose.msra.mxu0 %v183_v13 }
  0x1d   :  { %185 = vmatprep.subr.bf16.mxu0 %v225_v2 }
  0x24   :  { %187 = vmatpush3.bf16.xpose.msra.mxu0 %v186_v16 }
  0x25   :  { %188 = vmatprep.subr.bf16.mxu0 %v225_v2 }
  0x2c   :  { %190 = vmatpush3.bf16.xpose.msra.mxu0 %v189_v19 }
  0x2d   :  { %191 = vmatprep.subr.bf16.mxu0 %v225_v2 }
  0x34   :  { %193 = vmatpush3.bf16.xpose.msra.mxu0 %v192_v22 }
  0x35   :  { %194 = vmatprep.subr.bf16.mxu0 %v225_v2 }
  0x3c   :  { %196 = vmatpush3.bf16.xpose.msra.mxu0 %v195_v25 }
  0x43   :  { %171 = vmatmul.mubr.f32.vlgmr.msra.gmra.mrb[0].mxu0 %v18_v26 }
 0x116   :  { %v101_v27 = vpop.f32.mrb[0].mxu0 }
 0x117   :  { %v172_v28 = vpop.f32.mrb[1].mxu0  ;;  %106 = vst [vmem:[#allocation2] sm:$0xff] %v101_v27 }
 0x118   :  { %212 = shalt.err (!%p209_p4)
}
 0x119   :  { %s213_s19 = scalar_lea.hbm %s309_s2, 128 }
 0x11a   :  { %p214_p5 = scmp.ne.s32.totalorder %s309_s2, %s213_s19  ;;  %p217_p6 = scmp.lt.u32.totalorder %s213_s19, %s309_s2 }
 0x11c   :  { %p219_p7 = pnand %p217_p6, %p214_p5 }
 0x11e   :  { %222 = shalt.err (!%p219_p7)
}
 0x11f   :  { %116 = dma.vmem_to_hbm [thread:$0]  %s114_s16, 128, %s309_s2, [#allocation3]  }
 0x120   :  { %223 = dma.done.wait [#allocation3], 128  }
 0x121   :  { %224 = vsyncadd [#allocation3], 4294967168 }
 0x122   :  { %120 = vsyncpa [#allocation3], 1 }

</bundles_post_ra>
